<compile_context>
chip_gen: v7x
topology: tpu7x:2x2x1
jax: 0.10.0
libtpu: 0.0.40
codegen_flags: <defaults>
</compile_context>

<pallas_src>
import functools

import jax
import jax.numpy as jnp
from jax.experimental import pallas as pl
from jax.experimental.pallas import tpu as pltpu


def _dino_loss_kernel(sg_ref, sl_ref, t_ref, c_ref,                 # VMEM input tiles
                      out_ref,                                      # (1,1) f32 output
                      m_t_ref, l_t_ref, m_g_ref, l_g_ref,           # VMEM scratch
                      m_l_ref, l_l_ref, acc_ref,
                      *, inv_temp_s, inv_temp_t, inv_n_loss_terms,
                      n_diag_g, n_diag_l, v_g):
    pass_idx = pl.program_id(0)
    d_idx = pl.program_id(1)
    num_d = pl.num_programs(1)

    @pl.when(jnp.logical_and(pass_idx == 0, d_idx == 0))
    def _init():
        for m_ref, l_ref in ((m_t_ref, l_t_ref), (m_g_ref, l_g_ref),
                             (m_l_ref, l_l_ref)):
            m_ref[...] = jnp.full_like(m_ref, -jnp.inf)
            l_ref[...] = jnp.zeros_like(l_ref)
        acc_ref[...] = jnp.zeros_like(acc_ref)

    # Temperature-scaled logits for this D-block (upcast so bf16 inputs also work).
    x_t = (t_ref[...].astype(jnp.float32)
           - c_ref[...].astype(jnp.float32)) * inv_temp_t            # (V_t, bd)
    x_g = sg_ref[...].astype(jnp.float32) * inv_temp_s               # (V_g, bd)
    x_l = sl_ref[...].astype(jnp.float32) * inv_temp_s               # (V_l, bd)

    @pl.when(pass_idx == 0)
    def _pass0():
        # Online logsumexp statistics per row, accumulated across D-blocks.
        def update(x, m_ref, l_ref):
            bm = jnp.max(x, axis=-1, keepdims=True)
            m_new = jnp.maximum(m_ref[...], bm)
            l_ref[...] = (l_ref[...] * jnp.exp(m_ref[...] - m_new)
                          + jnp.sum(jnp.exp(x - m_new), axis=-1, keepdims=True))
            m_ref[...] = m_new
        update(x_t, m_t_ref, l_t_ref)
        update(x_g, m_g_ref, l_g_ref)
        update(x_l, m_l_ref, l_l_ref)

    @pl.when(pass_idx == 1)
    def _pass1():
        # Teacher softmax (row normalizers from pass 0); approx EUP reciprocal
        # + one Newton step on V_t elements keeps f32 accuracy at ~zero cost.
        inv_l_t = pl.reciprocal(l_t_ref[...], approx=True)
        inv_l_t = inv_l_t * (2.0 - l_t_ref[...] * inv_l_t)
        prob_t = jnp.exp(x_t - m_t_ref[...]) * inv_l_t               # (V_t, bd)
        # Student log-softmax blocks.
        lps_g = x_g - (m_g_ref[...] + jnp.log(l_g_ref[...]))         # (V_g, bd)
        lps_l = x_l - (m_l_ref[...] + jnp.log(l_l_ref[...]))         # (V_l, bd)

        # Factored cross term: sum_d (sum_i prob_t) * (sum_j log_prob_s).
        p_sum = jnp.sum(prob_t, axis=0, keepdims=True)               # (1, bd)
        l_sum = (jnp.sum(lps_g, axis=0, keepdims=True)
                 + jnp.sum(lps_l, axis=0, keepdims=True))            # (1, bd)
        cross = jnp.sum(p_sum * l_sum, axis=-1, keepdims=True)       # (1, 1)

        # Diagonal (i == j) correction; split sizes are compile-time constants.
        diag = jnp.zeros((1, 1), jnp.float32)
        if n_diag_g > 0:
            dg = jnp.sum(prob_t[:n_diag_g] * lps_g[:n_diag_g],
                         axis=-1, keepdims=True)                     # (n_diag_g, 1)
            diag = diag + jnp.sum(dg, axis=0, keepdims=True)
        if n_diag_l > 0:  # only when teacher has more views than student globals
            dl = jnp.sum(prob_t[v_g:v_g + n_diag_l] * lps_l[:n_diag_l],
                         axis=-1, keepdims=True)
            diag = diag + jnp.sum(dl, axis=0, keepdims=True)

        acc_ref[...] = acc_ref[...] + (cross - diag)

        @pl.when(d_idx == num_d - 1)
        def _finalize():
            out_ref[...] = -acc_ref[...] * inv_n_loss_terms


def _pick_block_d(d_dim):
    if d_dim % 128 != 0:
        return d_dim                      # full-extent block is always legal
    for cand in (2048, 1024, 512, 256, 128):
        if d_dim % cand == 0:
            return cand
    return d_dim


def dino_loss(out_student_global, out_student_local, out_teacher, center,
              temp_student, temp_teacher, cent_rate_m=None, *, block_d=None):
    """Pallas implementation of LossComputerDINO.forward.

    Rows of each input must index views (matching the PyTorch reference).
    cent_rate_m is only used by update_center (not forward); kept for API parity.
    """
    v_g, d_dim = out_student_global.shape
    v_l = out_student_local.shape[0]
    v_t = out_teacher.shape[0]
    v_s = v_g + v_l

    n_loss_terms = v_t * v_s - min(v_t, v_s)      # i == j pairs are skipped
    n_diag_g = min(v_t, v_g)                      # diagonal pairs vs student globals
    n_diag_l = max(0, min(v_t, v_s) - v_g)        # diagonal pairs vs student locals

    if block_d is None:
        block_d = _pick_block_d(d_dim)
    if d_dim % block_d != 0:
        raise ValueError("block_d must divide output_dim")
    num_d = d_dim // block_d

    kernel = functools.partial(
        _dino_loss_kernel,
        inv_temp_s=float(1.0 / temp_student),
        inv_temp_t=float(1.0 / temp_teacher),
        inv_n_loss_terms=float(1.0 / n_loss_terms),
        n_diag_g=n_diag_g, n_diag_l=n_diag_l, v_g=v_g)

    # VMEM budget: double-buffered input tiles (worst case f32) + small scratch.
    tile_bytes = (v_g + v_l + v_t + 1) * block_d * 4
    vmem_limit = int(min(32 * 1024 * 1024, max(16 * 1024 * 1024, 8 * tile_bytes)))

    out = pl.pallas_call(
        kernel,
        out_shape=jax.ShapeDtypeStruct((1, 1), jnp.float32),
        grid_spec=pltpu.PrefetchScalarGridSpec(
            num_scalar_prefetch=0,
            grid=(2, num_d),              # (pass, D-block); D-block varies fastest
            in_specs=[
                pl.BlockSpec((v_g, block_d), lambda p, d: (0, d)),   # student global
                pl.BlockSpec((v_l, block_d), lambda p, d: (0, d)),   # student local
                pl.BlockSpec((v_t, block_d), lambda p, d: (0, d)),   # teacher
                pl.BlockSpec((1, block_d), lambda p, d: (0, d)),     # center
            ],
            out_specs=pl.BlockSpec((1, 1), lambda p, d: (0, 0)),
            scratch_shapes=[
                pltpu.VMEM((v_t, 1), jnp.float32),   # m_t
                pltpu.VMEM((v_t, 1), jnp.float32),   # l_t
                pltpu.VMEM((v_g, 1), jnp.float32),   # m_g
                pltpu.VMEM((v_g, 1), jnp.float32),   # l_g
                pltpu.VMEM((v_l, 1), jnp.float32),   # m_l
                pltpu.VMEM((v_l, 1), jnp.float32),   # l_l
                pltpu.VMEM((1, 1), jnp.float32),     # acc
            ]),
        compiler_params=pltpu.CompilerParams(
            dimension_semantics=("arbitrary", "arbitrary"),
            vmem_limit_bytes=vmem_limit),
    )(out_student_global, out_student_local, out_teacher, center)
    return out[0, 0]


def dino_loss_ref(out_student_global, out_student_local, out_teacher, center,
                  temp_student, temp_teacher):
    """Pure-JAX reference mirroring the PyTorch forward exactly."""
    log_prob_s = jax.nn.log_softmax(
        jnp.concatenate([out_student_global, out_student_local], axis=0) / temp_student,
        axis=-1)
    prob_t = jax.nn.softmax((out_teacher - center) / temp_teacher, axis=-1)
    total = 0.0
    n = 0
    for i in range(prob_t.shape[0]):
        for j in range(log_prob_s.shape[0]):
            if i == j:
                continue
            total = total + jnp.sum(-prob_t[i] * log_prob_s[j])
            n += 1
    return total / n


# TODO(synk): update_center (momentum update of the `center` buffer) is a separate
# stateful method, not part of forward(), and is intentionally not implemented here.

if __name__ == "__main__":
    key = jax.random.PRNGKey(0)
    k1, k2, k3, k4 = jax.random.split(key, 4)

    V_T = 4          # teacher views
    V_G = 4          # student global views
    V_L = 8          # student local views
    D = 256          # output_dim (lane axis); block_d=128 exercises the D-tiled grid

    out_teacher = jax.random.normal(k1, (V_T, D), dtype=jnp.float32)
    out_student_global = jax.random.normal(k2, (V_G, D), dtype=jnp.float32)
    out_student_local = jax.random.normal(k3, (V_L, D), dtype=jnp.float32)
    # `center` buffer (zeros at __init__); use a nonzero value to exercise centering.
    center = 0.1 * jax.random.normal(k4, (1, D), dtype=jnp.float32)

    temp_student = 0.1
    temp_teacher = 0.04
    cent_rate_m = 0.9  # unused in forward

    loss = dino_loss(out_student_global, out_student_local, out_teacher, center,
                     temp_student, temp_teacher, cent_rate_m, block_d=128)
    loss = jax.block_until_ready(loss)

    ref = dino_loss_ref(out_student_global, out_student_local, out_teacher, center,
                        temp_student, temp_teacher)
    # Tolerance allows for the EUP approx-reciprocal (+Newton) teacher softmax and
    # the factored/reassociated f32 accumulation order.
    assert jnp.allclose(loss, ref, rtol=1e-3, atol=1e-3), (loss, ref)

    print("KERNEL_OK")
</pallas_src>

<mosaic_0001>
module attributes {stable_mosaic.version = 11 : i64} {
  func.func @_dino_loss_kernel(%arg0: i32, %arg1: i32, %arg2: memref<4x128xf32, #tpu.memory_space<vmem>>, %arg3: memref<8x128xf32, #tpu.memory_space<vmem>>, %arg4: memref<4x128xf32, #tpu.memory_space<vmem>>, %arg5: memref<1x128xf32, #tpu.memory_space<vmem>>, %arg6: memref<1x1xf32, #tpu.memory_space<vmem>>, %arg7: memref<4x1xf32, #tpu.memory_space<vmem>>, %arg8: memref<4x1xf32, #tpu.memory_space<vmem>>, %arg9: memref<4x1xf32, #tpu.memory_space<vmem>>, %arg10: memref<4x1xf32, #tpu.memory_space<vmem>>, %arg11: memref<8x1xf32, #tpu.memory_space<vmem>>, %arg12: memref<8x1xf32, #tpu.memory_space<vmem>>, %arg13: memref<1x1xf32, #tpu.memory_space<vmem>>) attributes {dimension_semantics = [#tpu.dimension_semantics<arbitrary>, #tpu.dimension_semantics<arbitrary>], iteration_bounds = array<i64: 2, 2>, scalar_prefetch = 0 : i64, scratch_operands = 7 : i64, tpu.core_type = #tpu.core_type<tc>, window_params = [{transform_indices = @transform_0, window_bounds = array<i64: 4, 128>}, {transform_indices = @transform_1, window_bounds = array<i64: 8, 128>}, {transform_indices = @transform_2, window_bounds = array<i64: 4, 128>}, {transform_indices = @transform_3, window_bounds = array<i64: 1, 128>}, {pipeline_mode = #tpu.pipeline_mode<synchronous>, transform_indices = @transform_4, window_bounds = array<i64: 1, 1>}]} {
    %c0_i32 = arith.constant 0 : i32
    %0 = arith.cmpi eq, %arg0, %c0_i32 : i32
    %c0_i32_0 = arith.constant 0 : i32
    %1 = arith.cmpi eq, %arg1, %c0_i32_0 : i32
    %2 = arith.andi %0, %1 : i1
    %3 = arith.extui %2 : i1 to i32
    %c0_i32_1 = arith.constant 0 : i32
    %4 = arith.cmpi ne, %3, %c0_i32_1 : i32
    scf.if %4 {
      %cst_14 = arith.constant 0xFF800000 : f32
      %23 = vector.broadcast %cst_14 : f32 to vector<4x1xf32>
      %c0_15 = arith.constant 0 : index
      %c0_16 = arith.constant 0 : index
      %24 = vector.load %arg7[%c0_15, %c0_16] : memref<4x1xf32, #tpu.memory_space<vmem>>, vector<4x1xf32>
      tpu.vector_store %arg7[%c0_15, %c0_16], %23 {strides = array<i32>} : memref<4x1xf32, #tpu.memory_space<vmem>>, vector<4x1xf32>,
      %cst_17 = arith.constant 0.000000e+00 : f32
      %25 = vector.broadcast %cst_17 : f32 to vector<4x1xf32>
      %c0_18 = arith.constant 0 : index
      %c0_19 = arith.constant 0 : index
      %26 = vector.load %arg8[%c0_18, %c0_19] : memref<4x1xf32, #tpu.memory_space<vmem>>, vector<4x1xf32>
      tpu.vector_store %arg8[%c0_18, %c0_19], %25 {strides = array<i32>} : memref<4x1xf32, #tpu.memory_space<vmem>>, vector<4x1xf32>,
      %cst_20 = arith.constant 0xFF800000 : f32
      %27 = vector.broadcast %cst_20 : f32 to vector<4x1xf32>
      %c0_21 = arith.constant 0 : index
      %c0_22 = arith.constant 0 : index
      %28 = vector.load %arg9[%c0_21, %c0_22] : memref<4x1xf32, #tpu.memory_space<vmem>>, vector<4x1xf32>
      tpu.vector_store %arg9[%c0_21, %c0_22], %27 {strides = array<i32>} : memref<4x1xf32, #tpu.memory_space<vmem>>, vector<4x1xf32>,
      %cst_23 = arith.constant 0.000000e+00 : f32
      %29 = vector.broadcast %cst_23 : f32 to vector<4x1xf32>
      %c0_24 = arith.constant 0 : index
      %c0_25 = arith.constant 0 : index
      %30 = vector.load %arg10[%c0_24, %c0_25] : memref<4x1xf32, #tpu.memory_space<vmem>>, vector<4x1xf32>
      tpu.vector_store %arg10[%c0_24, %c0_25], %29 {strides = array<i32>} : memref<4x1xf32, #tpu.memory_space<vmem>>, vector<4x1xf32>,
      %cst_26 = arith.constant 0xFF800000 : f32
      %31 = vector.broadcast %cst_26 : f32 to vector<8x1xf32>
      %c0_27 = arith.constant 0 : index
      %c0_28 = arith.constant 0 : index
      %32 = vector.load %arg11[%c0_27, %c0_28] : memref<8x1xf32, #tpu.memory_space<vmem>>, vector<8x1xf32>
      tpu.vector_store %arg11[%c0_27, %c0_28], %31 {strides = array<i32>} : memref<8x1xf32, #tpu.memory_space<vmem>>, vector<8x1xf32>,
      %cst_29 = arith.constant 0.000000e+00 : f32
      %33 = vector.broadcast %cst_29 : f32 to vector<8x1xf32>
      %c0_30 = arith.constant 0 : index
      %c0_31 = arith.constant 0 : index
      %34 = vector.load %arg12[%c0_30, %c0_31] : memref<8x1xf32, #tpu.memory_space<vmem>>, vector<8x1xf32>
      tpu.vector_store %arg12[%c0_30, %c0_31], %33 {strides = array<i32>} : memref<8x1xf32, #tpu.memory_space<vmem>>, vector<8x1xf32>,
      %cst_32 = arith.constant 0.000000e+00 : f32
      %35 = vector.broadcast %cst_32 : f32 to vector<1x1xf32>
      %c0_33 = arith.constant 0 : index
      %c0_34 = arith.constant 0 : index
      %36 = vector.load %arg13[%c0_33, %c0_34] : memref<1x1xf32, #tpu.memory_space<vmem>>, vector<1x1xf32>
      tpu.vector_store %arg13[%c0_33, %c0_34], %35 {strides = array<i32>} : memref<1x1xf32, #tpu.memory_space<vmem>>, vector<1x1xf32>,
    } else {
    }
    %c0 = arith.constant 0 : index
    %c0_2 = arith.constant 0 : index
    %5 = vector.load %arg4[%c0, %c0_2] : memref<4x128xf32, #tpu.memory_space<vmem>>, vector<4x128xf32>
    %c0_3 = arith.constant 0 : index
    %c0_4 = arith.constant 0 : index
    %6 = vector.load %arg5[%c0_3, %c0_4] : memref<1x128xf32, #tpu.memory_space<vmem>>, vector<1x128xf32>
    %7 = vector.broadcast %6 : vector<1x128xf32> to vector<4x128xf32>
    %8 = arith.subf %5, %7 : vector<4x128xf32>
    %cst = arith.constant 2.500000e+01 : f32
    %9 = vector.broadcast %cst : f32 to vector<4x128xf32>
    %10 = arith.mulf %8, %9 : vector<4x128xf32>
    %c0_5 = arith.constant 0 : index
    %c0_6 = arith.constant 0 : index
    %11 = vector.load %arg2[%c0_5, %c0_6] : memref<4x128xf32, #tpu.memory_space<vmem>>, vector<4x128xf32>
    %cst_7 = arith.constant 1.000000e+01 : f32
    %12 = vector.broadcast %cst_7 : f32 to vector<4x128xf32>
    %13 = arith.mulf %11, %12 : vector<4x128xf32>
    %c0_8 = arith.constant 0 : index
    %c0_9 = arith.constant 0 : index
    %14 = vector.load %arg3[%c0_8, %c0_9] : memref<8x128xf32, #tpu.memory_space<vmem>>, vector<8x128xf32>
    %cst_10 = arith.constant 1.000000e+01 : f32
    %15 = vector.broadcast %cst_10 : f32 to vector<8x128xf32>
    %16 = arith.mulf %14, %15 : vector<8x128xf32>
    %c0_i32_11 = arith.constant 0 : i32
    %17 = arith.cmpi eq, %arg0, %c0_i32_11 : i32
    %18 = arith.extui %17 : i1 to i32
    %c0_i32_12 = arith.constant 0 : i32
    %19 = arith.cmpi ne, %18, %c0_i32_12 : i32
    scf.if %19 {
      %cst_14 = arith.constant dense<0xFF800000> : vector<4xf32>
      %23 = vector.multi_reduction <maximumf>, %10, %cst_14 [1] : vector<4x128xf32> to vector<4xf32>
      %24 = vector.shape_cast %23 : vector<4xf32> to vector<4x1xf32>
      %c0_15 = arith.constant 0 : index
      %c0_16 = arith.constant 0 : index
      %25 = vector.load %arg7[%c0_15, %c0_16] : memref<4x1xf32, #tpu.memory_space<vmem>>, vector<4x1xf32>
      %26 = arith.maximumf %25, %24 : vector<4x1xf32>
      %c0_17 = arith.constant 0 : index
      %c0_18 = arith.constant 0 : index
      %27 = vector.load %arg8[%c0_17, %c0_18] : memref<4x1xf32, #tpu.memory_space<vmem>>, vector<4x1xf32>
      %c0_19 = arith.constant 0 : index
      %c0_20 = arith.constant 0 : index
      %28 = vector.load %arg7[%c0_19, %c0_20] : memref<4x1xf32, #tpu.memory_space<vmem>>, vector<4x1xf32>
      %29 = arith.subf %28, %26 : vector<4x1xf32>
      %30 = math.exp %29 : vector<4x1xf32>
      %31 = arith.mulf %27, %30 : vector<4x1xf32>
      %32 = vector.broadcast %26 : vector<4x1xf32> to vector<4x128xf32>
      %33 = arith.subf %10, %32 : vector<4x128xf32>
      %34 = math.exp %33 : vector<4x128xf32>
      %cst_21 = arith.constant dense<0.000000e+00> : vector<4xf32>
      %35 = vector.multi_reduction <add>, %34, %cst_21 [1] : vector<4x128xf32> to vector<4xf32>
      %36 = vector.shape_cast %35 : vector<4xf32> to vector<4x1xf32>
      %37 = arith.addf %31, %36 : vector<4x1xf32>
      %c0_22 = arith.constant 0 : index
      %c0_23 = arith.constant 0 : index
      %38 = vector.load %arg8[%c0_22, %c0_23] : memref<4x1xf32, #tpu.memory_space<vmem>>, vector<4x1xf32>
      tpu.vector_store %arg8[%c0_22, %c0_23], %37 {strides = array<i32>} : memref<4x1xf32, #tpu.memory_space<vmem>>, vector<4x1xf32>,
      %c0_24 = arith.constant 0 : index
      %c0_25 = arith.constant 0 : index
      %39 = vector.load %arg7[%c0_24, %c0_25] : memref<4x1xf32, #tpu.memory_space<vmem>>, vector<4x1xf32>
      tpu.vector_store %arg7[%c0_24, %c0_25], %26 {strides = array<i32>} : memref<4x1xf32, #tpu.memory_space<vmem>>, vector<4x1xf32>,
      %cst_26 = arith.constant dense<0xFF800000> : vector<4xf32>
      %40 = vector.multi_reduction <maximumf>, %13, %cst_26 [1] : vector<4x128xf32> to vector<4xf32>
      %41 = vector.shape_cast %40 : vector<4xf32> to vector<4x1xf32>
      %c0_27 = arith.constant 0 : index
      %c0_28 = arith.constant 0 : index
      %42 = vector.load %arg9[%c0_27, %c0_28] : memref<4x1xf32, #tpu.memory_space<vmem>>, vector<4x1xf32>
      %43 = arith.maximumf %42, %41 : vector<4x1xf32>
      %c0_29 = arith.constant 0 : index
      %c0_30 = arith.constant 0 : index
      %44 = vector.load %arg10[%c0_29, %c0_30] : memref<4x1xf32, #tpu.memory_space<vmem>>, vector<4x1xf32>
      %c0_31 = arith.constant 0 : index
      %c0_32 = arith.constant 0 : index
      %45 = vector.load %arg9[%c0_31, %c0_32] : memref<4x1xf32, #tpu.memory_space<vmem>>, vector<4x1xf32>
      %46 = arith.subf %45, %43 : vector<4x1xf32>
      %47 = math.exp %46 : vector<4x1xf32>
      %48 = arith.mulf %44, %47 : vector<4x1xf32>
      %49 = vector.broadcast %43 : vector<4x1xf32> to vector<4x128xf32>
      %50 = arith.subf %13, %49 : vector<4x128xf32>
      %51 = math.exp %50 : vector<4x128xf32>
      %cst_33 = arith.constant dense<0.000000e+00> : vector<4xf32>
      %52 = vector.multi_reduction <add>, %51, %cst_33 [1] : vector<4x128xf32> to vector<4xf32>
      %53 = vector.shape_cast %52 : vector<4xf32> to vector<4x1xf32>
      %54 = arith.addf %48, %53 : vector<4x1xf32>
      %c0_34 = arith.constant 0 : index
      %c0_35 = arith.constant 0 : index
      %55 = vector.load %arg10[%c0_34, %c0_35] : memref<4x1xf32, #tpu.memory_space<vmem>>, vector<4x1xf32>
      tpu.vector_store %arg10[%c0_34, %c0_35], %54 {strides = array<i32>} : memref<4x1xf32, #tpu.memory_space<vmem>>, vector<4x1xf32>,
      %c0_36 = arith.constant 0 : index
      %c0_37 = arith.constant 0 : index
      %56 = vector.load %arg9[%c0_36, %c0_37] : memref<4x1xf32, #tpu.memory_space<vmem>>, vector<4x1xf32>
      tpu.vector_store %arg9[%c0_36, %c0_37], %43 {strides = array<i32>} : memref<4x1xf32, #tpu.memory_space<vmem>>, vector<4x1xf32>,
      %cst_38 = arith.constant dense<0xFF800000> : vector<8xf32>
      %57 = vector.multi_reduction <maximumf>, %16, %cst_38 [1] : vector<8x128xf32> to vector<8xf32>
      %58 = vector.shape_cast %57 : vector<8xf32> to vector<8x1xf32>
      %c0_39 = arith.constant 0 : index
      %c0_40 = arith.constant 0 : index
      %59 = vector.load %arg11[%c0_39, %c0_40] : memref<8x1xf32, #tpu.memory_space<vmem>>, vector<8x1xf32>
      %60 = arith.maximumf %59, %58 : vector<8x1xf32>
      %c0_41 = arith.constant 0 : index
      %c0_42 = arith.constant 0 : index
      %61 = vector.load %arg12[%c0_41, %c0_42] : memref<8x1xf32, #tpu.memory_space<vmem>>, vector<8x1xf32>
      %c0_43 = arith.constant 0 : index
      %c0_44 = arith.constant 0 : index
      %62 = vector.load %arg11[%c0_43, %c0_44] : memref<8x1xf32, #tpu.memory_space<vmem>>, vector<8x1xf32>
      %63 = arith.subf %62, %60 : vector<8x1xf32>
      %64 = math.exp %63 : vector<8x1xf32>
      %65 = arith.mulf %61, %64 : vector<8x1xf32>
      %66 = vector.broadcast %60 : vector<8x1xf32> to vector<8x128xf32>
      %67 = arith.subf %16, %66 : vector<8x128xf32>
      %68 = math.exp %67 : vector<8x128xf32>
      %cst_45 = arith.constant dense<0.000000e+00> : vector<8xf32>
      %69 = vector.multi_reduction <add>, %68, %cst_45 [1] : vector<8x128xf32> to vector<8xf32>
      %70 = vector.shape_cast %69 : vector<8xf32> to vector<8x1xf32>
      %71 = arith.addf %65, %70 : vector<8x1xf32>
      %c0_46 = arith.constant 0 : index
      %c0_47 = arith.constant 0 : index
      %72 = vector.load %arg12[%c0_46, %c0_47] : memref<8x1xf32, #tpu.memory_space<vmem>>, vector<8x1xf32>
      tpu.vector_store %arg12[%c0_46, %c0_47], %71 {strides = array<i32>} : memref<8x1xf32, #tpu.memory_space<vmem>>, vector<8x1xf32>,
      %c0_48 = arith.constant 0 : index
      %c0_49 = arith.constant 0 : index
      %73 = vector.load %arg11[%c0_48, %c0_49] : memref<8x1xf32, #tpu.memory_space<vmem>>, vector<8x1xf32>
      tpu.vector_store %arg11[%c0_48, %c0_49], %60 {strides = array<i32>} : memref<8x1xf32, #tpu.memory_space<vmem>>, vector<8x1xf32>,
    } else {
    }
    %c1_i32 = arith.constant 1 : i32
    %20 = arith.cmpi eq, %arg0, %c1_i32 : i32
    %21 = arith.extui %20 : i1 to i32
    %c0_i32_13 = arith.constant 0 : i32
    %22 = arith.cmpi ne, %21, %c0_i32_13 : i32
    scf.if %22 {
      %c0_14 = arith.constant 0 : index
      %c0_15 = arith.constant 0 : index
      %23 = vector.load %arg8[%c0_14, %c0_15] : memref<4x1xf32, #tpu.memory_space<vmem>>, vector<4x1xf32>
      %24 = tpu.reciprocal %23 {approx = true} : vector<4x1xf32> -> vector<4x1xf32>
      %c0_16 = arith.constant 0 : index
      %c0_17 = arith.constant 0 : index
      %25 = vector.load %arg8[%c0_16, %c0_17] : memref<4x1xf32, #tpu.memory_space<vmem>>, vector<4x1xf32>
      %26 = arith.mulf %25, %24 : vector<4x1xf32>
      %cst_18 = arith.constant 2.000000e+00 : f32
      %27 = vector.broadcast %cst_18 : f32 to vector<4x1xf32>
      %28 = arith.subf %27, %26 : vector<4x1xf32>
      %29 = arith.mulf %24, %28 : vector<4x1xf32>
      %c0_19 = arith.constant 0 : index
      %c0_20 = arith.constant 0 : index
      %30 = vector.load %arg7[%c0_19, %c0_20] : memref<4x1xf32, #tpu.memory_space<vmem>>, vector<4x1xf32>
      %31 = vector.broadcast %30 : vector<4x1xf32> to vector<4x128xf32>
      %32 = arith.subf %10, %31 : vector<4x128xf32>
      %33 = math.exp %32 : vector<4x128xf32>
      %34 = vector.broadcast %29 : vector<4x1xf32> to vector<4x128xf32>
      %35 = arith.mulf %33, %34 : vector<4x128xf32>
      %c0_21 = arith.constant 0 : index
      %c0_22 = arith.constant 0 : index
      %36 = vector.load %arg9[%c0_21, %c0_22] : memref<4x1xf32, #tpu.memory_space<vmem>>, vector<4x1xf32>
      %c0_23 = arith.constant 0 : index
      %c0_24 = arith.constant 0 : index
      %37 = vector.load %arg10[%c0_23, %c0_24] : memref<4x1xf32, #tpu.memory_space<vmem>>, vector<4x1xf32>
      %38 = math.log %37 : vector<4x1xf32>
      %39 = arith.addf %36, %38 : vector<4x1xf32>
      %40 = vector.broadcast %39 : vector<4x1xf32> to vector<4x128xf32>
      %41 = arith.subf %13, %40 : vector<4x128xf32>
      %c0_25 = arith.constant 0 : index
      %c0_26 = arith.constant 0 : index
      %42 = vector.load %arg11[%c0_25, %c0_26] : memref<8x1xf32, #tpu.memory_space<vmem>>, vector<8x1xf32>
      %c0_27 = arith.constant 0 : index
      %c0_28 = arith.constant 0 : index
      %43 = vector.load %arg12[%c0_27, %c0_28] : memref<8x1xf32, #tpu.memory_space<vmem>>, vector<8x1xf32>
      %44 = math.log %43 : vector<8x1xf32>
      %45 = arith.addf %42, %44 : vector<8x1xf32>
      %46 = vector.broadcast %45 : vector<8x1xf32> to vector<8x128xf32>
      %47 = arith.subf %16, %46 : vector<8x128xf32>
      %cst_29 = arith.constant dense<0.000000e+00> : vector<128xf32>
      %48 = vector.multi_reduction <add>, %35, %cst_29 [0] : vector<4x128xf32> to vector<128xf32>
      %49 = vector.shape_cast %48 : vector<128xf32> to vector<1x128xf32>
      %cst_30 = arith.constant dense<0.000000e+00> : vector<128xf32>
      %50 = vector.multi_reduction <add>, %41, %cst_30 [0] : vector<4x128xf32> to vector<128xf32>
      %51 = vector.shape_cast %50 : vector<128xf32> to vector<1x128xf32>
      %cst_31 = arith.constant dense<0.000000e+00> : vector<128xf32>
      %52 = vector.multi_reduction <add>, %47, %cst_31 [0] : vector<8x128xf32> to vector<128xf32>
      %53 = vector.shape_cast %52 : vector<128xf32> to vector<1x128xf32>
      %54 = arith.addf %51, %53 : vector<1x128xf32>
      %55 = arith.mulf %49, %54 : vector<1x128xf32>
      %cst_32 = arith.constant dense<0.000000e+00> : vector<1xf32>
      %56 = vector.multi_reduction <add>, %55, %cst_32 [1] : vector<1x128xf32> to vector<1xf32>
      %57 = vector.shape_cast %56 : vector<1xf32> to vector<1x1xf32>
      %cst_33 = arith.constant 0.000000e+00 : f32
      %58 = vector.broadcast %cst_33 : f32 to vector<1x1xf32>
      %59 = arith.mulf %35, %41 : vector<4x128xf32>
      %cst_34 = arith.constant dense<0.000000e+00> : vector<4xf32>
      %60 = vector.multi_reduction <add>, %59, %cst_34 [1] : vector<4x128xf32> to vector<4xf32>
      %61 = vector.shape_cast %60 : vector<4xf32> to vector<4x1xf32>
      %cst_35 = arith.constant dense<0.000000e+00> : vector<1xf32>
      %62 = vector.multi_reduction <add>, %61, %cst_35 [0] : vector<4x1xf32> to vector<1xf32>
      %63 = vector.shape_cast %62 : vector<1xf32> to vector<1x1xf32>
      %64 = arith.addf %58, %63 : vector<1x1xf32>
      %c0_36 = arith.constant 0 : index
      %c0_37 = arith.constant 0 : index
      %65 = vector.load %arg13[%c0_36, %c0_37] : memref<1x1xf32, #tpu.memory_space<vmem>>, vector<1x1xf32>
      %66 = arith.subf %57, %64 : vector<1x1xf32>
      %67 = arith.addf %65, %66 : vector<1x1xf32>
      %c0_38 = arith.constant 0 : index
      %c0_39 = arith.constant 0 : index
      %68 = vector.load %arg13[%c0_38, %c0_39] : memref<1x1xf32, #tpu.memory_space<vmem>>, vector<1x1xf32>
      tpu.vector_store %arg13[%c0_38, %c0_39], %67 {strides = array<i32>} : memref<1x1xf32, #tpu.memory_space<vmem>>, vector<1x1xf32>,
      %c1_i32_40 = arith.constant 1 : i32
      %69 = arith.cmpi eq, %arg1, %c1_i32_40 : i32
      %70 = arith.extui %69 : i1 to i32
      %c0_i32_41 = arith.constant 0 : i32
      %71 = arith.cmpi ne, %70, %c0_i32_41 : i32
      scf.if %71 {
        %c0_42 = arith.constant 0 : index
        %c0_43 = arith.constant 0 : index
        %72 = vector.load %arg13[%c0_42, %c0_43] : memref<1x1xf32, #tpu.memory_space<vmem>>, vector<1x1xf32>
        %cst_44 = arith.constant 0.000000e+00 : f32
        %73 = vector.broadcast %cst_44 : f32 to vector<1x1xf32>
        %74 = arith.subf %73, %72 : vector<1x1xf32>
        %cst_45 = arith.constant 0.0227272734 : f32
        %75 = vector.broadcast %cst_45 : f32 to vector<1x1xf32>
        %76 = arith.mulf %74, %75 : vector<1x1xf32>
        %c0_46 = arith.constant 0 : index
        %c0_47 = arith.constant 0 : index
        %77 = vector.load %arg6[%c0_46, %c0_47] : memref<1x1xf32, #tpu.memory_space<vmem>>, vector<1x1xf32>
        tpu.vector_store %arg6[%c0_46, %c0_47], %76 {strides = array<i32>} : memref<1x1xf32, #tpu.memory_space<vmem>>, vector<1x1xf32>,
      } else {
      }
    } else {
    }
    return
  }
  func.func @transform_0(%arg0: i32, %arg1: i32) -> (i32, i32) {
    %c0_i32 = arith.constant 0 : i32
    %c0_i32_0 = arith.constant 0 : i32
    return %c0_i32, %arg1 : i32, i32
  }
  func.func @transform_1(%arg0: i32, %arg1: i32) -> (i32, i32) {
    %c0_i32 = arith.constant 0 : i32
    %c0_i32_0 = arith.constant 0 : i32
    return %c0_i32, %arg1 : i32, i32
  }
  func.func @transform_2(%arg0: i32, %arg1: i32) -> (i32, i32) {
    %c0_i32 = arith.constant 0 : i32
    %c0_i32_0 = arith.constant 0 : i32
    return %c0_i32, %arg1 : i32, i32
  }
  func.func @transform_3(%arg0: i32, %arg1: i32) -> (i32, i32) {
    %c0_i32 = arith.constant 0 : i32
    %c0_i32_0 = arith.constant 0 : i32
    return %c0_i32, %arg1 : i32, i32
  }
  func.func @transform_4(%arg0: i32, %arg1: i32) -> (i32, i32) {
    %c0_i32 = arith.constant 0 : i32
    %c0_i32_0 = arith.constant 0 : i32
    %c0_i32_1 = arith.constant 0 : i32
    return %c0_i32, %c0_i32_0 : i32, i32
  }
}

</mosaic_0001>

<bundles_post_ra>
// kernel: tpu_custom_call.1
= control target key start
LH: loop header
LB: loop body
LE: loop exit
PB: predicated region body
PF: predicated region fallthrough
CT: control target
= control target key end

     0   :  { %s1259_s0 = inlined_call_operand.hbm [shape: f32[4,256], index: 0, kind: input, shape index: {}]   ;;  %s1260_s1 = inlined_call_operand.hbm [shape: f32[8,256], index: 1, kind: input, shape index: {}]   ;;  %s1261_s2 = inlined_call_operand.hbm [shape: f32[4,256], index: 2, kind: input, shape index: {}]   ;;  %s1262_s3 = inlined_call_operand.vmem [shape: f32[1,256], index: 3, kind: input, shape index: {}]   ;;  %s1263_s4 = inlined_call_operand.hbm [shape: f32[1,1], index: 4, kind: output, shape index: {}]  }
   0x1   :  { %1270 = sst [smem:[#allocation21_spill]] %s1260_s1 }
   0x2   :  { %9 = vsyncpa [#allocation10], 0 }
   0x3   :  { %11 = vsyncpa [#allocation10 + $0x1], 0 }
   0x4   :  { %12 = vsyncpa [#allocation13], 0 }
   0x5   :  { %14 = vsyncpa [#allocation13 + $0x1], 0 }
   0x6   :  { %15 = vsyncpa [#allocation11], 0  ;;  %s983_s15 = smov 0   ;;  %s985_s16 = smov 0  }
   0x7   :  { %s987_s17 = smov 0   ;;  %s989_s18 = smov 0  }
   0x8   :  { %s991_s19 = smov 0   ;;  %s993_s20 = smov 0  }
   0x9   :  { %s995_s21 = smov 0   ;;  %s997_s22 = smov 0  }
   0xa LB: > { %s1022_s23 = sadd.s32 4294967295, %s948_s22   ;;  %s30_s24 = sadd.s32 1, %s940_s20  ;;  %s948_s22 = sphi %s997_s22, %s21_s22   ;;  %s944_s21 = sphi %s995_s21, %s1293_s21   ;;  %s940_s20 = sphi %s993_s20, %s1292_s20   ;;  %s936_s19 = sphi %s991_s19, %s1291_s19   ;;  %s932_s18 = sphi %s989_s18, %s1290_s18   ;;  %s928_s17 = sphi %s987_s17, %s1289_s17   ;;  %s924_s16 = sphi %s985_s16, %s1288_s16   ;;  %s920_s15 = sphi %s983_s15, %s1287_s15  }
   0xb   : > { %p31_p0 = scmp.ge.s32.totalorder %s30_s24, 2  ;;  %s33_s25 = sadd.s32 1, %s944_s21 }
   0xc   : > { %s40_s26 = sadd.s32 1, %s928_s17  ;;  %p47_p1 = scmp.ne.s32.totalorder %s928_s17, %s924_s16 }
   0xd   : > { %s1295_s24 = smov (%p31_p0, %s30_s24), 0  ;;  %s1297_s25 = smov (!%p31_p0, %s33_s25), %s944_s21 }
   0xe   : > { %1271 = sst [smem:[#allocation19_spill]] %s1295_s24  ;;  %s37_s27 = ssub.s32 %s940_s20, %s1295_s24 }
   0xf   : > { %p48_p2 = scmp.eq.s32.totalorder %s948_s22, 0  ;;  %p35_p3 = scmp.ge.s32.totalorder %s1297_s25, 2 }
  0x10   : > { %p38_p4 = scmp.eq.s32.totalorder %s37_s27, 0  ;;  %p53_p6 = scmp.ne.s32.totalorder %s924_s16, %s920_s15 }
  0x11   : > { %p49_p5 = por %p48_p2, %p47_p1  ;;  %s1299_s25 = smov (%p35_p3, %s1297_s25), 0 }
  0x12   : > { %1272 = sst [smem:[#allocation20_spill]] %s1299_s25  ;;  %p54_p7 = scmp.eq.s32.totalorder %s1022_s23, 0 }
  0x13   : > { %s1039_s28 = scalar_select %p38_p4, %s928_s17, %s40_s26  }
  0x14   : > { %p662_p8 = scmp.lt.s32.totalorder %s948_s22, 4  ;;  %s1044_s29 = sand.u32 1, %s928_s17  }
  0x15   : > { %p1046_p9 = por %p54_p7, %p53_p6  ;;  %s194_s5 = sand.u32 1, %s948_s22  }
  0x16   : > { %p1051_p10 = pnand %p662_p8, %p49_p5  ;;  %s626_s7 = sshll.u32 %s1044_s29, 3 }
  0x17   : > { %s1273_s30 = scalar_select %p1046_p9, 1, 0 }
  0x18   : > { %s1274_s6 = scalar_select %p1051_p10, 1, 0 }
  0x19   : > { %s627_s8 = sshll.u32 %s940_s20, 7  ;;  %s1275_s1 = sld [smem:[#allocation21_spill]] }
  0x1a   : > { %s198_s12 = scalar_lea.vmem [#allocation12], %s626_s7  ;;  %s1065_s14 = scalar_lea.sflag [#allocation13], %s194_s5 }
  0x1b   : > { %s205_s13 = sshll.u32 %s198_s12, 4  ;;  %p1071_p13 = pneg %p1051_p10  ;;  %s1062_s13 = int_to_ptr.vmem [resolvable:$true] %s205_s13 }
  0x1f   : > { %s1060_s11 = scalar_lea.hbm %s1275_s1, %s627_s8  ;;  %s763_s7 = scalar_lea.hbm %s1275_s1, 256 }
  0x20   : > { %s758_s15 = scalar_lea.hbm %s1060_s11, 128  ;;  %p764_p2 = scmp.lt.u32.totalorder %s1060_s11, %s1275_s1 }
  0x21   : > { %p759_p12 = scmp.ne.s32.totalorder %s1060_s11, %s758_s15  ;;  %p765_p3 = scmp.lt.u32.totalorder %s763_s7, %s758_s15 }
  0x22   : > { %p767_p5 = scmp.lt.u32.totalorder %s758_s15, %s1060_s11 }
  0x23   : > { %p761_p0 = pnand %p1071_p13, %p759_p12  ;;  %p766_p4 = por %p765_p3, %p764_p2 }
  0x25   : > { %p762_p1 = pneg %p761_p0  ;;  %p768_p6 = por %p767_p5, %p766_p4 }
  0x27   : > { %p769_p7 = pnand %p768_p6, %p762_p1 }
  0x29   : > { %772 = shalt.err (!%p769_p7)
}
  0x2a   : > { %s773_s5 = scalar_lea.vmem %s1062_s13, 128  ;;  %s950_s12 = smov [#allocation12]  }
  0x2b   : > { %p774_p8 = scmp.ne.s32.totalorder %s1062_s13, %s773_s5  ;;  %s778_s27 = sshll.u32 %s950_s12, 4  ;;  %s779_s27 = int_to_ptr.vmem [resolvable:$false] %s778_s27 }
  0x2c   : > { %s780_s8 = scalar_lea.vmem %s779_s27, 256  ;;  %p781_p11 = scmp.lt.s32.totalorder %s1062_s13, %s779_s27 }
  0x2d   : > { %p776_p12 = pnand %p774_p8, %p1071_p13  ;;  %p782_p9 = scmp.lt.s32.totalorder %s780_s8, %s773_s5 }
  0x2f   : > { %p777_p0 = pneg %p776_p12  ;;  %p783_p2 = por %p782_p9, %p781_p11 }
  0x31   : > { %p784_p3 = pnand %p783_p2, %p777_p0 }
  0x33   : > { %787 = shalt.err (!%p784_p3)
}
  0x34   : > { %658 = dma.hbm_to_vmem [thread:$0]  (!%p1051_p10), %s1060_s11, 128, %s1062_s13, %s1065_s14  }
  0x35   : > { %p234_p1 = scmp.lt.s32.totalorder %s948_s22, 5  ;;  %p1277_p4 = scmp.ge.s32.totalorder %s948_s22, 1 }
  0x36   : > { %s1266_s7 = sshll.u32 %s1044_s29, 2  ;;  %s1265_s9 = sshll.u32 %s940_s20, 6 }
  0x37   : > { %p1098_p5 = pnand %p1277_p4, %p234_p1  ;;  %s1109_s12 = scalar_lea.hbm %s1259_s0, %s1265_s9 }
  0x38   : > { %s180_s11 = scalar_lea.vmem [#allocation9], %s1266_s7  ;;  %s177_s27 = scalar_lea.sflag [#allocation10], %s1044_s29 }
  0x39   : > { %s1278_s15 = scalar_select %p1098_p5, 1, 0 }
  0x3a   : > { %s187_s13 = sshll.u32 %s180_s11, 4  ;;  %s788_s8 = scalar_lea.hbm %s1109_s12, 64  ;;  %s188_s13 = int_to_ptr.vmem [resolvable:$true] %s187_s13 }
  0x3b   : > { %p789_p9 = scmp.ne.s32.totalorder %s1109_s12, %s788_s8  ;;  %s793_s10 = scalar_lea.hbm %s1259_s0, 128 }
  0x3c   : > { %p794_p7 = scmp.lt.u32.totalorder %s1109_s12, %s1259_s0  ;;  %p795_p8 = scmp.lt.u32.totalorder %s793_s10, %s788_s8 }
  0x3d   : > { %p791_p11 = pnand %p789_p9, %p1071_p13  ;;  %p797_p0 = scmp.lt.u32.totalorder %s788_s8, %s1109_s12 }
  0x3e   : > { %p796_p12 = por %p795_p8, %p794_p7 }
  0x3f   : > { %p792_p6 = pneg %p791_p11 }
  0x40   : > { %p798_p2 = por %p797_p0, %p796_p12 }
  0x42   : > { %p799_p3 = pnand %p798_p2, %p792_p6 }
  0x44   : > { %802 = shalt.err (!%p799_p3)
}
  0x45   : > { %s803_s11 = scalar_lea.vmem %s188_s13, 64  ;;  %s951_s7 = smov [#allocation9]  }
  0x46   : > { %p804_p1 = scmp.ne.s32.totalorder %s188_s13, %s803_s11  ;;  %s808_s24 = sshll.u32 %s951_s7, 4  ;;  %s809_s24 = int_to_ptr.vmem [resolvable:$false] %s808_s24 }
  0x47   : > { %s810_s1 = scalar_lea.vmem %s809_s24, 128  ;;  %p811_p11 = scmp.lt.s32.totalorder %s188_s13, %s809_s24 }
  0x48   : > { %p806_p4 = pnand %p804_p1, %p1071_p13  ;;  %p812_p5 = scmp.lt.s32.totalorder %s810_s1, %s803_s11 }
  0x4a   : > { %p807_p9 = pneg %p806_p4  ;;  %p813_p10 = por %p812_p5, %p811_p11 }
  0x4c   : > { %p814_p7 = pnand %p813_p10, %p807_p9 }
  0x4e   : > { %817 = shalt.err (!%p814_p7)
}
  0x4f   : > { %p1279_p8 = scmp.ne.s32.totalorder %s1274_s6, 0  ;;  %s1280_s25 = sshll.u32 %s940_s20, 6 }
  0x50   : > { %s1136_s10 = scalar_lea.hbm %s1261_s2, %s1280_s25  ;;  %s1281_s7 = sshll.u32 %s1044_s29, 2 }
  0x51   : > { %655 = dma.hbm_to_vmem [thread:$0]  (!%p1279_p8), %s1109_s12, 64, %s188_s13, %s177_s27  }
  0x52   : > { %s216_s24 = scalar_lea.vmem [#allocation14], %s1281_s7  ;;  %s818_s11 = scalar_lea.hbm %s1136_s10, 64 }
  0x53   : > { %s223_s5 = sshll.u32 %s216_s24, 4  ;;  %p819_p10 = scmp.ne.s32.totalorder %s1136_s10, %s818_s11  ;;  %s224_s5 = int_to_ptr.vmem [resolvable:$true] %s223_s5 }
  0x54   : > { %s823_s27 = scalar_lea.hbm %s1261_s2, 128  ;;  %p824_p12 = scmp.lt.u32.totalorder %s1136_s10, %s1261_s2 }
  0x55   : > { %p821_p5 = pnand %p819_p10, %p1071_p13  ;;  %p825_p0 = scmp.lt.u32.totalorder %s823_s27, %s818_s11 }
  0x56   : > { %p827_p3 = scmp.lt.u32.totalorder %s818_s11, %s1136_s10 }
  0x57   : > { %p822_p6 = pneg %p821_p5  ;;  %p826_p2 = por %p825_p0, %p824_p12 }
  0x59   : > { %p828_p1 = por %p827_p3, %p826_p2 }
  0x5b   : > { %p829_p4 = pnand %p828_p1, %p822_p6 }
  0x5d   : > { %832 = shalt.err (!%p829_p4)
}
  0x5e   : > { %s833_s29 = scalar_lea.vmem %s224_s5, 64  ;;  %s952_s9 = smov [#allocation14]  }
  0x5f   : > { %p834_p9 = scmp.ne.s32.totalorder %s224_s5, %s833_s29  ;;  %s838_s8 = sshll.u32 %s952_s9, 4  ;;  %s839_s8 = int_to_ptr.vmem [resolvable:$false] %s838_s8 }
  0x60   : > { %s840_s7 = scalar_lea.vmem %s839_s8, 128  ;;  %p841_p10 = scmp.lt.s32.totalorder %s224_s5, %s839_s8 }
  0x61   : > { %p836_p11 = pnand %p834_p9, %p1071_p13  ;;  %p842_p5 = scmp.lt.s32.totalorder %s840_s7, %s833_s29 }
  0x63   : > { %p837_p7 = pneg %p836_p11  ;;  %p843_p8 = por %p842_p5, %p841_p10 }
  0x65   : > { %p844_p0 = pnand %p843_p8, %p837_p7 }
  0x67   : > { %847 = shalt.err (!%p844_p0)
}
  0x68   : > { %p1282_p12 = scmp.ne.s32.totalorder %s1274_s6, 0  ;;  %p1283_p6 = scmp.ne.s32.totalorder %s1278_s15, 0 }
  0x69   : > { %s240_s26 = sand.u32 (!%p1283_p6), 1, %s924_s16   ;;  %p1284_p13 = scmp.ne.s32.totalorder (!%p1283_p6), %s1273_s30, 0 }
  0x6a   : > { %661 = dma.hbm_to_vmem [thread:$0]  (!%p1282_p12), %s1136_s10, 64, %s224_s5, %s1065_s14  }
  0x6b   : > { %238 = sbr.rel (%p1283_p6) target bundleno = 934 (0x3a6), region = 36  ;;  %s631_s24 = sshll.u32 (!%p1283_p6), %s240_s26, 2 }
  0x6c   : > { %s241_s11 = scalar_lea.sflag (!%p1283_p6), [#allocation10], %s240_s26  ;;  %s1161_s12 = scalar_lea.vmem (!%p1283_p6), [#allocation9], %s631_s24 }
  0x72   : > { %907 = dma.done.wait (%p1284_p13), %s241_s11, 64  }
  0x73   : > { %909 = vsyncadd (%p1284_p13), %s241_s11, 4294967232  ;;  %s249_s6 = sand.u32 1, %s1022_s23   ;;  %s632_s13 = sshll.u32 %s240_s26, 3 }
  0x74   : > { %s250_s14 = scalar_lea.sflag [#allocation13], %s249_s6  ;;  %s253_s10 = scalar_lea.vmem [#allocation12], %s632_s13 }
  0x75   : > { %911 = dma.done.wait (%p1284_p13), %s250_s14, 192  }
  0x76   : > { %913 = vsyncadd (%p1284_p13), %s250_s14, 4294967104  ;;  %p295_p8 = scmp.lt.s32.totalorder %s932_s18, 1  ;;  %p298_p2 = scmp.eq.s32.totalorder %s936_s19, 0 }
  0x77   : > { %p299_p3 = scmp.eq.s32.totalorder %s932_s18, 0  ;;  %s262_s25 = scalar_lea.vmem [#allocation14], %s631_s24 }
  0x78   : > { %s296_s15 = scalar_select %p295_p8, %s932_s18, 1 }
  0x79   : > { %p300_p1 = pnand %p299_p3, %p298_p2 }
  0x7a   : > { %s297_s1 = scalar_lea.vmem %s1262_s3, %s296_s15  ;;  %vm304_vm0 = vcmask (!%p300_p1), 3072   ;;  %vm309_vm1 = vcmask (!%p300_p1), 7168   ;;  %v953_v0 = vmov (!%p300_p1), -inf   ;;  %v954_v1 = vmov (!%p300_p1), 0.0  }
  0x7b   : > { %303 = sbr.rel (%p300_p1) target bundleno = 130 (0x82), region = 52  ;;  %305 = vst.msk [vmem:[#allocation2] sm:$0xf] (!%p300_p1), %vm304_vm0, %v953_v0  ;;  %307 = vst.msk [vmem:[#allocation4] sm:$0xf] (!%p300_p1), %vm304_vm0, %v953_v0  ;;  %vm312_vm2 = vcmask (!%p300_p1), 0  }
  0x7c   : > { %306 = vst.msk [vmem:[#allocation3] sm:$0xf] (!%p300_p1), %vm304_vm0, %v954_v1  ;;  %308 = vst.msk [vmem:[#allocation5] sm:$0xf] (!%p300_p1), %vm304_vm0, %v954_v1 }
  0x7d   : > { %310 = vst.msk [vmem:[#allocation6] sm:$0xff] (!%p300_p1), %vm309_vm1, %v953_v0  ;;  %311 = vst.msk [vmem:[#allocation7] sm:$0xff] (!%p300_p1), %vm309_vm1, %v954_v1 }
  0x7e   : > { %313 = vst.msk [vmem:[#allocation8] sm:$0x1] (!%p300_p1), %vm312_vm2, %v954_v1 }
  0x82 PF: > { %v314_v2 = vld [vmem:[%s262_s25] sm:$0xf]  ;;  %v324_v4 = vld [vmem:[%s1161_s12] sm:$0xf]  ;;  %v326_v7 = vld [vmem:[%s253_s10] sm:$0xff]  ;;  %p635_p4 = scmp.ne.s32.totalorder %s936_s19, 0 }
  0x83   : > { %v634_v3 = vld [vmem:[%s297_s1] ss:$0 sm:$0xff]  ;;  %v1180_v6 = vmul.f32 10.0, %v324_v4  ;;  %v1182_v8 = vmul.f32 10.0, %v326_v7  ;;  %vm331_vm3 = vcmask (!%p635_p4), 1043456   ;;  %v955_v12 = vmov (!%p635_p4), 0  }
  0x84   : > { %v322_v5 = vsub.f32 %v314_v2, %v634_v3  ;;  %330 = sbr.rel (%p635_p4) target bundleno = 575 (0x23f), region = 56  ;;  %734 = vset.pattern.permute.xlu1 (!%p635_p4), %v955_v12  ;;  %735 = vset.pattern.permute.xlu0 (!%p635_p4), %v955_v12  ;;  %v383_v13 = vld [vmem:[#allocation6] sm:$0xff] (!%p635_p4)  ;;  %v335_v14 = vld [vmem:[#allocation2] sm:$0xf] (!%p635_p4)  ;;  %vm401_vm4 = vcmask (!%p635_p4), 7168   ;;  %vm354_vm5 = vcmask (!%p635_p4), 3072  }
  0x85   : > { %381 = vmax.xlane.f32.xlu1 (!%p635_p4), %v1182_v8  ;;  %v357_v11 = vsel (!%p635_p4), %vm331_vm3, %v1180_v6, -inf  ;;  %v360_v20 = vld [vmem:[#allocation4] sm:$0xf] (!%p635_p4)  ;;  %v337_v43 = vld [vmem:[#allocation3] sm:$0xf] (!%p635_p4)  ;;  %v385_v47 = vld [vmem:[#allocation7] sm:$0xff] (!%p635_p4) }
  0x86   : > { %v1184_v9 = vmul.f32 25.0, %v322_v5  ;;  %v362_v50 = vld [vmem:[#allocation5] sm:$0xf] (!%p635_p4) }
  0x88   : > { %v332_v10 = vsel (!%p635_p4), %vm331_vm3, %v1184_v9, -inf }
  0x89   : > { %333 = vmax.xlane.f32.xlu0 (!%p635_p4), %v332_v10 }
  0x8d   : > { %358 = vmax.xlane.f32.xlu0 %v357_v11 }
 0x112   : > { %v382_v15 = vpop.xlane.xlu1 %381 }
 0x113   : > { %v384_v16 = vmax.f32 %v383_v13, %v382_v15 }
 0x115   : > { %v386_v19 = vsub.f32 %v383_v13, %v384_v16  ;;  %403 = vst.msk [vmem:[#allocation6] sm:$0xff] %vm401_vm4, %v384_v16 }
 0x116   : > { %v334_v17 = vpop.xlane.xlu0 %333 }
 0x117   : > { %v336_v18 = vmax.f32 %v335_v14, %v334_v17  ;;  %v387_v40 = vmul.f32 1.442695, %v386_v19 }
 0x119   : > { %v338_v21 = vsub.f32 %v335_v14, %v336_v18  ;;  %356 = vst.msk [vmem:[#allocation2] sm:$0xf] %vm354_vm5, %v336_v18  ;;  %344 = vperm.xlu1 %734, %v336_v18  }
 0x11a   : > { %v359_v22 = vpop.xlane.xlu0 %358 }
 0x11b   : > { %v361_v23 = vmax.f32 %v360_v20, %v359_v22  ;;  %v339_v39 = vmul.f32 1.442695, %v338_v21 }
 0x11d   : > { %v363_v24 = vsub.f32 %v360_v20, %v361_v23  ;;  %380 = vst.msk [vmem:[#allocation4] sm:$0xf] %vm354_vm5, %v361_v23  ;;  %392 = vperm.xlu1 %734, %v384_v16   ;;  %369 = vperm.xlu0 %735, %v361_v23  }
 0x11f   : > { %v364_v41 = vmul.f32 1.442695, %v363_v24 }
 0x198   : > { %v345_v25 = vpop.permute.xlu1 %344 }
 0x199   : > { %v347_v26 = vsub.f32 %v1184_v9, %v345_v25 }
 0x19b   : > { %v348_v27 = vmul.f32 1.442695, %v347_v26 }
 0x19c   : > { %v393_v28 = vpop.permute.xlu1 %392  ;;  %v370_v29 = vpop.permute.xlu0 %369 }
 0x19d   : > { %736 = vpow2.f32 %v348_v27  ;;  %v395_v30 = vsub.f32 %v1182_v8, %v393_v28  ;;  %v372_v31 = vsub.f32 %v1180_v6, %v370_v29 }
 0x19f   : > { %v396_v32 = vmul.f32 1.442695, %v395_v30  ;;  %v373_v33 = vmul.f32 1.442695, %v372_v31 }
 0x1a1   : > { %738 = vpow2.f32 %v396_v32 }
 0x1a2   : > { %740 = vpow2.f32 %v373_v33 }
 0x1a3   : > { %742 = vpow2.f32 %v339_v39 }
 0x1a4   : > { %744 = vpow2.f32 %v387_v40 }
 0x1a5   : > { %746 = vpow2.f32 %v364_v41 }
 0x1a7   : > { %v737_v34 = vpop.eup %736 }
 0x1a8   : > { %v350_v35 = vsel %vm331_vm3, %v737_v34, 0.0 }
 0x1a9   : > { %351 = vadd.xlane.f32.xlu1 %v350_v35 }
 0x1ab   : > { %v739_v36 = vpop.eup %738 }
 0x1ac   : > { %v741_v37 = vpop.eup %740 }
 0x1ad   : > { %398 = vadd.xlane.f32.xlu1 %v739_v36  ;;  %v375_v38 = vsel %vm331_vm3, %v741_v37, 0.0  ;;  %v743_v42 = vpop.eup %742 }
 0x1ae   : > { %376 = vadd.xlane.f32.xlu0 %v375_v38  ;;  %v341_v44 = vmul.f32 %v743_v42, %v337_v43  ;;  %v745_v45 = vpop.eup %744 }
 0x1af   : > { %v747_v48 = vpop.eup %746  ;;  %v389_v51 = vmul.f32 %v745_v45, %v385_v47 }
 0x1b0   : > { %v366_v53 = vmul.f32 %v747_v48, %v362_v50 }
 0x236   : > { %v352_v46 = vpop.xlane.xlu1 %351 }
 0x237   : > { %v353_v49 = vadd.f32 %v352_v46, %v341_v44 }
 0x239   : > { %355 = vst.msk [vmem:[#allocation3] sm:$0xf] %vm354_vm5, %v353_v49 }
 0x23a   : > { %v399_v52 = vpop.xlane.xlu1 %398 }
 0x23b   : > { %v400_v54 = vadd.f32 %v399_v52, %v389_v51  ;;  %v377_v55 = vpop.xlane.xlu0 %376 }
 0x23c   : > { %v378_v56 = vadd.f32 %v377_v55, %v366_v53 }
 0x23d   : > { %402 = vst.msk [vmem:[#allocation7] sm:$0xff] %vm401_vm4, %v400_v54 }
 0x23e   : > { %379 = vst.msk [vmem:[#allocation5] sm:$0xf] %vm354_vm5, %v378_v56 }
 0x23f PF: > { %p636_p9 = scmp.ne.s32.totalorder %s936_s19, 1 }
 0x240   : > { %v413_v57 = vld [vmem:[#allocation2] sm:$0xf] (!%p636_p9)  ;;  %v956_v58 = vmov (!%p636_p9), 0   ;;  %v408_v60 = vld [vmem:[#allocation3] sm:$0xf] (!%p636_p9)  ;;  %v439_v10 = vld [vmem:[#allocation6] sm:$0xff] (!%p636_p9) }
 0x241   : > { %407 = sbr.rel (%p636_p9) target bundleno = 909 (0x38d), region = 60  ;;  %748 = vset.pattern.permute.xlu0 (!%p636_p9), %v956_v58  ;;  %749 = vset.pattern.permute.xlu1 (!%p636_p9), %v956_v58  ;;  %v428_v63 = vld [vmem:[#allocation4] sm:$0xf] (!%p636_p9)  ;;  %vm450_vm6 = vcmask (!%p636_p9), 1043456   ;;  %v487_v52 = vld [vmem:[#allocation8] sm:$0x1] (!%p636_p9) }
 0x242   : > { %416 = vperm.xlu0 (!%p636_p9), %748, %v413_v57   ;;  %vm490_vm7 = vcmask (!%p636_p9), 0   ;;  %p637_p11 = scmp.ne.s32.totalorder (!%p636_p9), %s932_s18, 1 }
 0x244   : > { %v440_v61 = vld [vmem:[#allocation7] sm:$0xff] (!%p636_p9) }
 0x245   : > { %v429_v59 = vld [vmem:[#allocation5] sm:$0xf] (!%p636_p9) }
 0x246   : > { %750 = vlog2.f32 (!%p636_p9), %v429_v59 }
 0x247   : > { %752 = vrcp.f32 (!%p636_p9), %v408_v60 }
 0x248   : > { %754 = vlog2.f32 %v440_v61 }
 0x250   : > { %v751_v62 = vpop.eup %750 }
 0x251   : > { %v753_v0 = vpop.eup %752  ;;  %v431_v1 = vmul.f32 0.6931472, %v751_v62 }
 0x252   : > { %v755_v2 = vpop.eup %754  ;;  %v410_v3 = vmul.f32 %v753_v0, %v408_v60 }
 0x253   : > { %v432_v4 = vadd.f32 %v431_v1, %v428_v63  ;;  %v442_v7 = vmul.f32 0.6931472, %v755_v2 }
 0x254   : > { %v411_v5 = vsub.f32 2.0, %v410_v3 }
 0x255   : > { %435 = vperm.xlu0 %748, %v432_v4   ;;  %v443_v12 = vadd.f32 %v442_v7, %v439_v10 }
 0x256   : > { %v412_v11 = vmul.f32 %v753_v0, %v411_v5 }
 0x258   : > { %424 = vperm.xlu1 %749, %v412_v11  }
 0x25c   : > { %446 = vperm.xlu1 %749, %v443_v12  }
 0x2c1   : > { %v417_v13 = vpop.permute.xlu0 %416 }
 0x2c2   : > { %v419_v14 = vsub.f32 %v1184_v9, %v417_v13 }
 0x2c4   : > { %v420_v15 = vmul.f32 1.442695, %v419_v14 }
 0x2c6   : > { %756 = vpow2.f32 %v420_v15 }
 0x2d0   : > { %v757_v17 = vpop.eup %756 }
 0x2d4   : > { %v436_v16 = vpop.permute.xlu0 %435 }
 0x2d5   : > { %v438_v18 = vsub.f32 %v1180_v6, %v436_v16 }
 0x2d7   : > { %v458_v19 = vsel %vm450_vm6, %v438_v18, 0.0  ;;  %v425_v20 = vpop.permute.xlu1 %424 }
 0x2d8   : > { %v459_v21 = vrot.slane %v458_v19, 4  ;;  %v427_v22 = vmul.f32 %v757_v17, %v425_v20 }
 0x2da   : > { %v460_v23 = vadd.f32 %v459_v21, %v458_v19  ;;  %v451_v24 = vsel %vm450_vm6, %v427_v22, 0.0  ;;  %v475_v25 = vmul.f32 %v438_v18, %v427_v22 }
 0x2db   : > { %v452_v26 = vrot.slane %v451_v24, 4  ;;  %v447_v27 = vpop.permute.xlu1 %446 }
 0x2dc   : > { %v461_v28 = vrot.slane %v460_v23, 2  ;;  %v449_v9 = vsub.f32 %v1182_v8, %v447_v27  ;;  %v476_v29 = vsel %vm450_vm6, %v475_v25, 0.0 }
 0x2dd   : > { %v453_v30 = vadd.f32 %v452_v26, %v451_v24  ;;  %477 = vadd.xlane.f32.xlu0 %v476_v29 }
 0x2de   : > { %v465_v31 = vrot.slane %v449_v9, 4  ;;  %v462_v32 = vadd.f32 %v461_v28, %v460_v23 }
 0x2df   : > { %v454_v6 = vrot.slane %v453_v30, 2 }
 0x2e0   : > { %v466_v33 = vadd.f32 %v465_v31, %v449_v9  ;;  %v463_v37 = vrot.slane %v462_v32, 1 }
 0x2e1   : > { %v455_v35 = vadd.f32 %v454_v6, %v453_v30 }
 0x2e2   : > { %v467_v34 = vrot.slane %v466_v33, 2  ;;  %v464_v40 = vadd.f32 %v463_v37, %v462_v32 }
 0x2e3   : > { %v456_v39 = vrot.slane %v455_v35, 1 }
 0x2e4   : > { %v468_v36 = vadd.f32 %v467_v34, %v466_v33 }
 0x2e5   : > { %v457_v42 = vadd.f32 %v456_v39, %v455_v35 }
 0x2e6   : > { %v469_v38 = vrot.slane %v468_v36, 1 }
 0x2e8   : > { %v470_v41 = vadd.f32 %v469_v38, %v468_v36 }
 0x2ea   : > { %v471_v43 = vadd.f32 %v470_v41, %v464_v40 }
 0x2ec   : > { %v472_v44 = vmul.f32 %v471_v43, %v457_v42 }
 0x2ee   : > { %473 = vadd.xlane.f32.xlu1 %v472_v44 }
 0x36a   : > { %v478_v8 = vpop.xlane.xlu0 %477 }
 0x36b   : > { %v479_v45 = vsel %vm450_vm6, %v478_v8, 0.0 }
 0x36c   : > { %v480_v46 = vrot.slane %v479_v45, 4 }
 0x36e   : > { %v481_v47 = vadd.f32 %v480_v46, %v479_v45 }
 0x370   : > { %v482_v48 = vrot.slane %v481_v47, 2 }
 0x372   : > { %v483_v49 = vadd.f32 %v482_v48, %v481_v47 }
 0x374   : > { %v484_v50 = vrot.slane %v483_v49, 1 }
 0x376   : > { %v485_v51 = vadd.f32 %v484_v50, %v483_v49 }
 0x37a   : > { %495 = sbr.rel (%p637_p11) target bundleno = 909 (0x38d), region = 64 }
 0x37b   : > { %v474_v53 = vpop.xlane.xlu1 %473 }
 0x37c   : > { %v488_v54 = vsub.f32 %v474_v53, %v485_v51 }
 0x37e   : > { %v489_v55 = vadd.f32 %v488_v54, %v487_v52 }
 0x380   : > { %491 = vst.msk [vmem:[#allocation8] sm:$0x1] %vm490_vm7, %v489_v55 }
 0x387   : > { %v496_v56 = vld [vmem:[#allocation8] sm:$0x1] }
 0x388   : > { %v497_v57 = vsub.f32 0.0, %v496_v56 }
 0x38a   : > { %v498_v58 = vmul.f32 0.022727273, %v497_v57 }
 0x38c   : > { %499 = vst.msk [vmem:[#allocation15] sm:$0x1] %vm490_vm7, %v498_v58 }
 0x38d PF: > { %p663_p7 = scmp.eq.s32.totalorder %s1022_s23, 3  ;;  %s957_s19 = smov [#allocation15]  }
 0x38e   : > { %s507_s30 = sshll.u32 %s957_s19, 4  ;;  %s508_s30 = int_to_ptr.vmem [resolvable:$true] %s507_s30 }
 0x38f   : > { %s848_s29 = scalar_lea.vmem %s508_s30, 16  ;;  %s854_s9 = scalar_lea.vmem %s508_s30, 32 }
 0x390   : > { %p849_p10 = scmp.ne.s32.totalorder %s508_s30, %s848_s29  ;;  %p855_p12 = scmp.lt.s32.totalorder %s508_s30, %s508_s30 }
 0x391   : > { %p856_p6 = scmp.lt.s32.totalorder %s854_s9, %s848_s29 }
 0x392   : > { %p850_p5 = pnand %p849_p10, %p663_p7 }
 0x393   : > { %p857_p13 = por %p856_p6, %p855_p12 }
 0x394   : > { %p851_p0 = pneg %p850_p5 }
 0x396   : > { %p858_p8 = pnand %p857_p13, %p851_p0 }
 0x398   : > { %861 = shalt.err (!%p858_p8)
}
 0x399   : > { %s862_s7 = scalar_lea.hbm %s1263_s4, 16 }
 0x39a   : > { %p863_p2 = scmp.ne.s32.totalorder %s1263_s4, %s862_s7  ;;  %p868_p4 = scmp.lt.u32.totalorder %s862_s7, %s1263_s4 }
 0x39c   : > { %p864_p3 = pnand %p863_p2, %p663_p7 }
 0x39e   : > { %p865_p1 = pneg %p864_p3 }
 0x3a0   : > { %p870_p9 = pnand %p868_p4, %p865_p1 }
 0x3a2   : > { %873 = shalt.err (!%p870_p9)
}
 0x3a3   : > { %649 = dma.vmem_to_hbm [thread:$0]  (%p663_p7), %s508_s30, 16, %s1263_s4, [#allocation11]  }
 0x3a4   : > { %915 = dma.done.wait (%p663_p7), [#allocation11], 16  }
 0x3a5   : > { %917 = vsyncadd (%p663_p7), [#allocation11], 4294967280 }
 0x3a6 PF: > { %s21_s22 = sadd.s32 1, %s948_s22   ;;  %s1285_s14 = sld [smem:[#allocation19_spill]] }
 0x3a7   : > { %p18_p11 = scmp.ge.s32.totalorder %s21_s22, 6   ;;  %s1286_s10 = sld [smem:[#allocation20_spill]] }
 0x3a8   : > { %s1287_s15 = smov %s924_s16  ;;  %s1288_s16 = smov %s928_s17 }
 0x3a9   : > { %s1289_s17 = smov %s1039_s28  ;;  %s1290_s18 = smov %s940_s20 }
 0x3aa   : > { %s1291_s19 = smov %s944_s21  ;;  %20 = sbr.rel (!%p18_p11) target bundleno = 10 (0xa), region = 116 }
 0x3ac   : > { %s1292_s20 = smov %s1285_s14 }
 0x3ad   : > { %s1293_s21 = smov %s1286_s10 }
 0x3b1   :  { %520 = vsyncpa [#allocation10], 1 }
 0x3b2   :  { %522 = vsyncpa [#allocation10 + $0x1], 1 }
 0x3b3   :  { %523 = vsyncpa [#allocation13], 1 }
 0x3b4   :  { %525 = vsyncpa [#allocation13 + $0x1], 1 }
 0x3b5   :  { %526 = vsyncpa [#allocation11], 1 }
 0x3b6   :  { %528 = vsyncpa [#allocation11 + $0x1], 1 }

</bundles_post_ra>
